<compile_context>
chip_gen: v5e
topology: v5e:2x2
jax: 0.10.0
libtpu: 0.0.40
codegen_flags: <defaults>
</compile_context>

<pallas_src>
import functools

import jax
import jax.numpy as jnp
from jax import lax
from jax.experimental import pallas as pl
from jax.experimental.pallas import tpu as pltpu


# ---------------------------------------------------------------------------
# helpers
# ---------------------------------------------------------------------------

def _pick_tile(size, target, align):
    """Largest multiple of `align` that divides `size`, capped at `target`.
    Falls back to the full extent (always a legal BlockSpec block)."""
    if size <= target:
        return size
    t = (target // align) * align
    while t >= align:
        if size % t == 0:
            return t
        t -= align
    return size


# ---------------------------------------------------------------------------
# tiled matmul kernel (used for to_qkv and to_out projections)
# ---------------------------------------------------------------------------

def _matmul_kernel(a_ref, b_ref, o_ref, acc_ref):
    @pl.when(pl.program_id(2) == 0)
    def _():
        acc_ref[...] = jnp.zeros_like(acc_ref)

    acc_ref[...] += jnp.dot(a_ref[...], b_ref[...],
                            preferred_element_type=jnp.float32)

    @pl.when(pl.program_id(2) == pl.num_programs(2) - 1)
    def _():
        o_ref[...] = acc_ref[...].astype(o_ref.dtype)


def matmul(a, b, *, tm=256, tn=256, tk=256, out_dtype=None):
    """a: (M, K) @ b: (K, N) -> (M, N), f32 accumulation on the MXU."""
    M, K = a.shape
    K2, N = b.shape
    assert K == K2
    out_dtype = out_dtype or a.dtype

    tm = _pick_tile(M, tm, 8)      # sublane axis
    tn = _pick_tile(N, tn, 128)    # lane axis (keep output lane-dense)
    tk = _pick_tile(K, tk, 128)    # lane axis of A / sublane axis of B

    cost = pl.CostEstimate(
        flops=2 * M * N * K,
        transcendentals=0,
        bytes_accessed=(M * K + K * N) * a.dtype.itemsize
        + M * N * jnp.dtype(out_dtype).itemsize)

    return pl.pallas_call(
        _matmul_kernel,
        out_shape=jax.ShapeDtypeStruct((M, N), out_dtype),
        grid_spec=pltpu.PrefetchScalarGridSpec(
            num_scalar_prefetch=0,
            grid=(M // tm, N // tn, K // tk),
            in_specs=[pl.BlockSpec((tm, tk), lambda i, j, k: (i, k)),
                      pl.BlockSpec((tk, tn), lambda i, j, k: (k, j))],
            out_specs=pl.BlockSpec((tm, tn), lambda i, j, k: (i, j)),
            scratch_shapes=[pltpu.VMEM((tm, tn), jnp.float32)]),
        compiler_params=pltpu.CompilerParams(
            dimension_semantics=("parallel", "parallel", "arbitrary")),
        cost_estimate=cost,
    )(a, b)


# ---------------------------------------------------------------------------
# flash-style attention kernel: grid = (batch*head, q_tile, kv_tile)
# ---------------------------------------------------------------------------

def _flash_attn_kernel(q_ref, k_ref, v_ref, o_ref, m_sc, l_sc, acc_sc):
    kv = pl.program_id(2)

    @pl.when(kv == 0)
    def _():
        m_sc[...] = jnp.full_like(m_sc, -jnp.inf)
        l_sc[...] = jnp.zeros_like(l_sc)
        acc_sc[...] = jnp.zeros_like(acc_sc)

    q = q_ref[0]                                   # (tq, d)  -- scale pre-folded
    k = k_ref[0]                                   # (tk, d)
    v = v_ref[0]                                   # (tk, d)

    # scores without any explicit transpose: contract over d.
    s = lax.dot_general(q, k, (((1,), (1,)), ((), ())),
                        preferred_element_type=jnp.float32)          # (tq, tk)

    # TODO(synk): mask / rotary_emb / qk_norm / attention dropout paths are not
    # emitted (all disabled in the default module config).

    m_prev = m_sc[...]                             # (tq, 1) f32
    m_new = jnp.maximum(m_prev, jnp.max(s, axis=-1, keepdims=True))
    alpha = jnp.exp(m_prev - m_new)
    p = jnp.exp(s - m_new)                         # (tq, tk) f32

    l_sc[...] = alpha * l_sc[...] + jnp.sum(p, axis=-1, keepdims=True)
    acc_sc[...] = alpha * acc_sc[...] + jnp.dot(
        p.astype(v.dtype), v, preferred_element_type=jnp.float32)
    m_sc[...] = m_new

    @pl.when(kv == pl.num_programs(2) - 1)
    def _():
        o_ref[0] = (acc_sc[...]
                    * pl.reciprocal(l_sc[...], approx=True)).astype(o_ref.dtype)


def flash_attention(q, k, v, *, tq=128, tk=128):
    """q, k, v: (BH, n, d); softmax scale must already be folded into q."""
    BH, n, d = q.shape
    tq = _pick_tile(n, tq, 8)
    tkv = _pick_tile(n, tk, 8)

    cost = pl.CostEstimate(
        flops=4 * BH * n * n * d,
        transcendentals=BH * n * n,
        bytes_accessed=4 * BH * n * d * q.dtype.itemsize)

    # NOTE: for long sequences, pipeline_mode=pl.Buffered(3) on the K/V specs
    # can further hide KV-stream DMA latency; default double-buffering is used
    # here for portability.
    return pl.pallas_call(
        _flash_attn_kernel,
        out_shape=jax.ShapeDtypeStruct((BH, n, d), q.dtype),
        grid_spec=pltpu.PrefetchScalarGridSpec(
            num_scalar_prefetch=0,
            grid=(BH, n // tq, n // tkv),
            in_specs=[pl.BlockSpec((1, tq, d), lambda b, i, j: (b, i, 0)),
                      pl.BlockSpec((1, tkv, d), lambda b, i, j: (b, j, 0)),
                      pl.BlockSpec((1, tkv, d), lambda b, i, j: (b, j, 0))],
            out_specs=pl.BlockSpec((1, tq, d), lambda b, i, j: (b, i, 0)),
            scratch_shapes=[pltpu.VMEM((tq, 1), jnp.float32),    # m
                            pltpu.VMEM((tq, 1), jnp.float32),    # l
                            pltpu.VMEM((tq, d), jnp.float32)]),  # acc
        compiler_params=pltpu.CompilerParams(
            dimension_semantics=("parallel", "parallel", "arbitrary")),
        cost_estimate=cost,
    )(q, k, v)


# ---------------------------------------------------------------------------
# full Attention forward
# ---------------------------------------------------------------------------

def attention_forward(x, w_qkv, w_out, *, heads, dim_head, compute_dtype=None):
    """x: (b, n, dim); w_qkv: (dim, 3*heads*dim_head); w_out: (heads*dim_head, dim).

    compute_dtype=jnp.bfloat16 is recommended on v6e/v7x (bf16 MXU, half the
    HBM/VMEM traffic); accumulation and softmax statistics stay f32.
    """
    b, n, dim = x.shape
    dim_inner = heads * dim_head
    out_dtype = x.dtype
    cdt = compute_dtype or x.dtype

    # Fold the softmax scale into the Q columns of the QKV weight:
    # removes the O(h*n^2) elementwise scaling of `sim` entirely.
    scale = dim_head ** (-0.5)
    w_qkv = jnp.concatenate(
        [w_qkv[:, :dim_inner] * scale, w_qkv[:, dim_inner:]], axis=-1)

    # --- to_qkv projection: one lane-dense MXU matmul over all tokens/heads ---
    x2d = x.reshape(b * n, dim).astype(cdt)
    qkv = matmul(x2d, w_qkv.astype(cdt), out_dtype=cdt)      # (b*n, 3*dim_inner)

    # head split: 'b n (3 h d) -> 3, (b h), n, d'  (wrapper-side relayout)
    qkv = qkv.reshape(b, n, 3, heads, dim_head).transpose(2, 0, 3, 1, 4)
    q = qkv[0].reshape(b * heads, n, dim_head)
    k = qkv[1].reshape(b * heads, n, dim_head)
    v = qkv[2].reshape(b * heads, n, dim_head)

    # --- flash attention ---
    o = flash_attention(q, k, v)                             # (b*h, n, d)

    # 'b h n d -> (b n) (h d)'
    o = (o.reshape(b, heads, n, dim_head)
          .transpose(0, 2, 1, 3)
          .reshape(b * n, dim_inner))

    # --- to_out projection ---
    out = matmul(o, w_out.astype(cdt), out_dtype=out_dtype)  # (b*n, dim)
    return out.reshape(b, n, dim)


# ---------------------------------------------------------------------------
# pure-JAX reference (mirrors the PyTorch forward exactly)
# ---------------------------------------------------------------------------

def attention_reference(x, w_qkv, w_out, *, heads, dim_head):
    b, n, dim = x.shape
    dim_inner = heads * dim_head
    qkv = x @ w_qkv                                          # (b, n, 3*dim_inner)
    q, k, v = jnp.split(qkv, 3, axis=-1)

    def to_heads(t):
        return t.reshape(b, n, heads, dim_head).transpose(0, 2, 1, 3)

    q, k, v = map(to_heads, (q, k, v))
    scale = dim_head ** (-0.5)
    sim = jnp.einsum('bhid,bhjd->bhij', q, k) * scale
    attn = jax.nn.softmax(sim, axis=-1)
    out = jnp.einsum('bhij,bhjd->bhid', attn, v)
    out = out.transpose(0, 2, 1, 3).reshape(b, n, dim_inner)
    return out @ w_out


if __name__ == "__main__":
    # Small config consistent with the module: dim=32, heads=4, dim_head=8,
    # seq=8, batch=2.
    batch, seq, dim = 2, 8, 32
    heads, dim_head = 4, 8
    dim_inner = heads * dim_head

    key = jax.random.PRNGKey(0)
    kx, kqkv, kout = jax.random.split(key, 3)

    x = jax.random.normal(kx, (batch, seq, dim), dtype=jnp.float32)
    # Deterministic nn.Linear-style init, stored pre-transposed as (in, out).
    w_qkv = jax.random.uniform(kqkv, (dim, 3 * dim_inner), dtype=jnp.float32,
                               minval=-1.0, maxval=1.0) * (dim ** -0.5)
    w_out = jax.random.uniform(kout, (dim_inner, dim), dtype=jnp.float32,
                               minval=-1.0, maxval=1.0) * (dim_inner ** -0.5)

    out = attention_forward(x, w_qkv, w_out, heads=heads, dim_head=dim_head)
    out = jax.block_until_ready(out)

    ref = attention_reference(x, w_qkv, w_out, heads=heads, dim_head=dim_head)
    assert out.shape == (batch, seq, dim)
    # approx reciprocal in the softmax finalize -> slightly relaxed tolerance
    assert jnp.allclose(out, ref, atol=5e-3, rtol=5e-3), "mismatch vs JAX reference"

    print("KERNEL_OK")
</pallas_src>

<mosaic_0001>
module attributes {stable_mosaic.version = 11 : i64} {
  func.func @_matmul_kernel(%arg0: i32, %arg1: i32, %arg2: i32, %arg3: memref<16x32xf32, #tpu.memory_space<vmem>>, %arg4: memref<32x96xf32, #tpu.memory_space<vmem>>, %arg5: memref<16x96xf32, #tpu.memory_space<vmem>>, %arg6: memref<16x96xf32, #tpu.memory_space<vmem>>) attributes {dimension_semantics = [#tpu.dimension_semantics<parallel>, #tpu.dimension_semantics<parallel>, #tpu.dimension_semantics<arbitrary>], iteration_bounds = array<i64: 1, 1, 1>, scalar_prefetch = 0 : i64, scratch_operands = 1 : i64, tpu.core_type = #tpu.core_type<tc>, window_params = [{transform_indices = @transform_0, window_bounds = array<i64: 16, 32>}, {transform_indices = @transform_1, window_bounds = array<i64: 32, 96>}, {transform_indices = @transform_2, window_bounds = array<i64: 16, 96>}]} {
    %c0_i32 = arith.constant 0 : i32
    %0 = arith.cmpi eq, %arg2, %c0_i32 : i32
    %1 = arith.extui %0 : i1 to i32
    %c0_i32_0 = arith.constant 0 : i32
    %2 = arith.cmpi ne, %1, %c0_i32_0 : i32
    scf.if %2 {
      %cst_10 = arith.constant 0.000000e+00 : f32
      %12 = vector.broadcast %cst_10 : f32 to vector<16x96xf32>
      %c0_11 = arith.constant 0 : index
      %c0_12 = arith.constant 0 : index
      %13 = vector.load %arg6[%c0_11, %c0_12] : memref<16x96xf32, #tpu.memory_space<vmem>>, vector<16x96xf32>
      tpu.vector_store %arg6[%c0_11, %c0_12], %12 {strides = array<i32>} : memref<16x96xf32, #tpu.memory_space<vmem>>, vector<16x96xf32>,
    } else {
    }
    %c0 = arith.constant 0 : index
    %c0_1 = arith.constant 0 : index
    %3 = vector.load %arg6[%c0, %c0_1] : memref<16x96xf32, #tpu.memory_space<vmem>>, vector<16x96xf32>
    %c0_2 = arith.constant 0 : index
    %c0_3 = arith.constant 0 : index
    %4 = vector.load %arg3[%c0_2, %c0_3] : memref<16x32xf32, #tpu.memory_space<vmem>>, vector<16x32xf32>
    %c0_4 = arith.constant 0 : index
    %c0_5 = arith.constant 0 : index
    %5 = vector.load %arg4[%c0_4, %c0_5] : memref<32x96xf32, #tpu.memory_space<vmem>>, vector<32x96xf32>
    %cst = arith.constant dense<0.000000e+00> : vector<16x96xf32>
    %6 = tpu.matmul %4, %5, %cst {dimension_numbers = #tpu.dot_dimension_numbers<[1], [0], [0], [1], [0, 0, 1, 1], [], []>} : vector<16x32xf32>, vector<32x96xf32>, vector<16x96xf32> -> vector<16x96xf32>
    %7 = arith.addf %3, %6 : vector<16x96xf32>
    %c0_6 = arith.constant 0 : index
    %c0_7 = arith.constant 0 : index
    %8 = vector.load %arg6[%c0_6, %c0_7] : memref<16x96xf32, #tpu.memory_space<vmem>>, vector<16x96xf32>
    tpu.vector_store %arg6[%c0_6, %c0_7], %7 {strides = array<i32>} : memref<16x96xf32, #tpu.memory_space<vmem>>, vector<16x96xf32>,
    %c0_i32_8 = arith.constant 0 : i32
    %9 = arith.cmpi eq, %arg2, %c0_i32_8 : i32
    %10 = arith.extui %9 : i1 to i32
    %c0_i32_9 = arith.constant 0 : i32
    %11 = arith.cmpi ne, %10, %c0_i32_9 : i32
    scf.if %11 {
      %c0_10 = arith.constant 0 : index
      %c0_11 = arith.constant 0 : index
      %12 = vector.load %arg6[%c0_10, %c0_11] : memref<16x96xf32, #tpu.memory_space<vmem>>, vector<16x96xf32>
      %c0_12 = arith.constant 0 : index
      %c0_13 = arith.constant 0 : index
      %13 = vector.load %arg5[%c0_12, %c0_13] : memref<16x96xf32, #tpu.memory_space<vmem>>, vector<16x96xf32>
      tpu.vector_store %arg5[%c0_12, %c0_13], %12 {strides = array<i32>} : memref<16x96xf32, #tpu.memory_space<vmem>>, vector<16x96xf32>,
    } else {
    }
    return
  }
  func.func @transform_0(%arg0: i32, %arg1: i32, %arg2: i32) -> (i32, i32) {
    %c0_i32 = arith.constant 0 : i32
    return %arg0, %arg2 : i32, i32
  }
  func.func @transform_1(%arg0: i32, %arg1: i32, %arg2: i32) -> (i32, i32) {
    %c0_i32 = arith.constant 0 : i32
    return %arg2, %arg1 : i32, i32
  }
  func.func @transform_2(%arg0: i32, %arg1: i32, %arg2: i32) -> (i32, i32) {
    %c0_i32 = arith.constant 0 : i32
    return %arg0, %arg1 : i32, i32
  }
}

</mosaic_0001>

<bundles_post_ra>
// kernel: tpu_custom_call.1
= control target key start
LH: loop header
LB: loop body
LE: loop exit
PB: predicated region body
PF: predicated region fallthrough
CT: control target
= control target key end

     0   :  { %7 = vsyncpa [#allocation4], 0  ;;  %s256_s0 = inlined_call_operand.hbm [shape: f32[16,32], index: 0, kind: input, shape index: {}]   ;;  %s257_s1 = inlined_call_operand.hbm [shape: f32[32,96], index: 1, kind: input, shape index: {}]   ;;  %s258_s2 = inlined_call_operand.hbm [shape: f32[16,96], index: 2, kind: output, shape index: {}]  }
   0x1   :  { %8 = vsyncpa [#allocation7], 0 }
   0x2   :  { %9 = vsyncpa [#allocation5], 0  ;;  %s14_s11 = sshll.u32 %s256_s0, 4  ;;  %s211_s12 = smov [#allocation3]   ;;  %s15_s11 = int_to_ptr.hbm [resolvable:$true] %s14_s11 }
   0x3   :  { %s16_s13 = sshll.u32 %s211_s12, 4  ;;  %s27_s16 = sshll.u32 %s257_s1, 4  ;;  %s17_s13 = int_to_ptr.vmem [resolvable:$true] %s16_s13  ;;  %s28_s16 = int_to_ptr.hbm [resolvable:$true] %s27_s16 }
   0x4   :  { %s212_s17 = smov 128   ;;  %s213_s18 = smov 8  }
   0x5   :  { %22 = dma.hbm_to_vmem [thread:$0]  %s15_s11, 256, %s17_s13, [#allocation4], %s212_s17, %s212_s17, %s213_s18  }
   0x6   :  { %s214_s19 = smov [#allocation6]  }
   0x7   :  { %s29_s20 = sshll.u32 %s214_s19, 4  ;;  %s30_s20 = int_to_ptr.vmem [resolvable:$true] %s29_s20 }
   0x8   :  { %35 = dma.hbm_to_vmem [thread:$0]  %s28_s16, 512, %s30_s20, [#allocation7], %s212_s17, %s212_s17, %s213_s18  }
   0x9   :  { %205 = dma.done.wait [#allocation4], 256  }
   0xa   :  { %206 = vsyncadd [#allocation4], 4294967040 }
   0xb   :  { %207 = dma.done.wait [#allocation7], 512  }
   0xc   :  { %208 = vsyncadd [#allocation7], 4294966784  ;;  %vm48_vm0 = vcmask 785408   ;;  %v215_v0 = vmov 0.0   ;;  %v58_v1 = vld [vmem:[#allocation6 + $0x18] sm:$0xff]  ;;  %v57_v2 = vld [vmem:[#allocation6 + $0x10] sm:$0xff] }
   0xd   :  { %49 = vst.msk [vmem:[#allocation2] sm:$0xff] %vm48_vm0, %v215_v0  ;;  %78 = vmatpush.msra.mxu0 %v58_v1  ;;  %123 = vmatpush.msra.mxu1 %v58_v1  ;;  %v56_v3 = vld [vmem:[#allocation6 + $0x8] sm:$0xff]  ;;  %v55_v4 = vld [vmem:[#allocation6] sm:$0xff]  ;;  %v53_v5 = vld [vmem:[#allocation3] sm:$0xff]  ;;  %vm59_vm1 = vcmask 261120   ;;  %s216_s0 = smov [#allocation8]  }
   0xe   :  { %50 = vst.msk [vmem:[#allocation2 + $0x8] sm:$0xff] %vm48_vm0, %v215_v0  ;;  %v54_v6 = vld [vmem:[#allocation3 + $0x8] sm:$0xff]  ;;  %s105_s1 = sshll.u32 %s216_s0, 4  ;;  %s107_s23 = sshll.u32 %s258_s2, 4  ;;  %s106_s1 = int_to_ptr.vmem [resolvable:$true] %s105_s1  ;;  %s108_s23 = int_to_ptr.hbm [resolvable:$true] %s107_s23 }
   0xf   :  { %79 = vmatpush.msra.mxu0 %v57_v2  ;;  %124 = vmatpush.msra.mxu1 %v57_v2 }
  0x11   :  { %80 = vmatpush.msra.mxu0 %v56_v3  ;;  %125 = vmatpush.msra.mxu1 %v56_v3 }
  0x13   :  { %81 = vmatpush.msra.mxu0 %v55_v4  ;;  %126 = vmatpush.msra.mxu1 %v55_v4 }
  0x14   :  { %121 = vmatmul.msk.f32.vlgmr.msra.gmra.mxu0 %vm59_vm1, %v53_v5  ;;  %122 = vmatmul.msk.f32.vlgmr.msra.gmra.mxu1 %vm59_vm1, %v54_v6  ;;  %v51_v7 = vld [vmem:[#allocation2] sm:$0xff] }
  0x15   :  { %v52_v8 = vld [vmem:[#allocation2 + $0x8] sm:$0xff] }
  0x91   :  { %v83_v9 = vpop.f32.mrf.mxu0  ;;  %v86_v10 = vpop.f32.mrf.mxu1 }
  0x92   :  { %v89_v11 = vadd.f32 %v83_v9, %v51_v7  ;;  %v90_v12 = vadd.f32 %v86_v10, %v52_v8 }
  0x94   :  { %92 = vst.msk [vmem:[#allocation2] sm:$0xff] %vm48_vm0, %v89_v11 }
  0x95   :  { %93 = vst.msk [vmem:[#allocation2 + $0x8] sm:$0xff] %vm48_vm0, %v90_v12 }
  0x9b   :  { %v97_v13 = vld [vmem:[#allocation2] sm:$0xff] }
  0x9c   :  { %v98_v14 = vld [vmem:[#allocation2 + $0x8] sm:$0xff]  ;;  %99 = vst.msk [vmem:[#allocation8] sm:$0xff] %vm48_vm0, %v97_v13 }
  0x9d   :  { %100 = vst.msk [vmem:[#allocation8 + $0x8] sm:$0xff] %vm48_vm0, %v98_v14 }
  0x9e   :  { %113 = dma.vmem_to_hbm [thread:$0]  %s106_s1, 256, %s108_s23, [#allocation5], %s212_s17, %s212_s17, %s213_s18  }
  0x9f   :  { %209 = dma.done.wait [#allocation5], 256  }
  0xa0   :  { %210 = vsyncadd [#allocation5], 4294967040 }
  0xa1   :  { %118 = vsyncpa [#allocation4], 1 }
  0xa2   :  { %119 = vsyncpa [#allocation7], 1 }
  0xa3   :  { %120 = vsyncpa [#allocation5], 1 }

</bundles_post_ra>
